<compile_context>
chip_gen: v5e
topology: v5e:2x2
jax: 0.10.0
libtpu: 0.0.40
codegen_flags: <defaults>
</compile_context>

<pallas_src>
import functools

import jax
import jax.numpy as jnp
from jax import lax
from jax.experimental import pallas as pl
from jax.experimental.pallas import tpu as pltpu


def _round_up(n, m):
    return ((n + m - 1) // m) * m


def _mlp_kernel_lane_dense(x_ref, w1_ref, b1_ref, w2t_ref, b2_ref, o_ref):
    # x: (TB, IN_PAD) mm-dtype; w1: (IN_PAD, HID_PAD) mm-dtype; b1: (1, HID_PAD) f32
    # w2t: (1, HID_PAD) mm-dtype (transposed layer-2 column, out_dim == 1)
    # b2: (1,) f32 in SMEM; o: (1, TB)  -> lane-dense output row.
    h = jnp.dot(x_ref[...], w1_ref[...], preferred_element_type=jnp.float32)  # MXU
    h = jnp.maximum(h + b1_ref[...], 0.0)                                     # f32 VPU
    # (1, HID) x (TB, HID) contracting HID -> (1, TB): output lands lane-dense.
    out = lax.dot_general(
        w2t_ref[...], h.astype(w2t_ref.dtype),
        dimension_numbers=(((1,), (1,)), ((), ())),
        preferred_element_type=jnp.float32)
    o_ref[...] = (out + b2_ref[0]).astype(o_ref.dtype)


def _mlp_kernel_matmul(x_ref, w1_ref, b1_ref, w2_ref, b2_ref, o_ref):
    # General out_dim > 1 path: two MXU matmuls, standard (TB, OUT) output.
    h = jnp.dot(x_ref[...], w1_ref[...], preferred_element_type=jnp.float32)
    h = jnp.maximum(h + b1_ref[...], 0.0)
    out = jnp.dot(h.astype(w2_ref.dtype), w2_ref[...],
                  preferred_element_type=jnp.float32) + b2_ref[...]
    o_ref[...] = out.astype(o_ref.dtype)


def continue_model_forward(x, w1, b1, w2, b2, *, tile_b=512,
                           matmul_dtype=jnp.bfloat16):
    """x: (B, in_dim); w1: (in_dim, hidden); b1: (1, hidden);
    w2: (hidden, out_dim); b2: (1, out_dim)  ->  (B, out_dim)."""
    batch, in_dim = x.shape
    hidden = w1.shape[1]
    out_dim = w2.shape[1]
    out_dtype = x.dtype
    f32 = jnp.float32
    mm = jnp.dtype(matmul_dtype)

    # Pad lane / contraction dims to 128; zero padding is exact through the net.
    in_pad = _round_up(in_dim, 128)
    hid_pad = _round_up(hidden, 128)

    # Batch tile: multiple of 128 (lane width; also satisfies bf16 (16,128)
    # sublane packing and MXU-friendly widths).
    b_pad_min = _round_up(batch, 128)
    tb = min(_round_up(tile_b, 128), b_pad_min)
    # v7x megacore: if the whole batch fits in one tile but could be split,
    # halve the tile so the "parallel" grid axis has >= 2 steps.
    if tb >= b_pad_min and b_pad_min >= 256:
        tb = max(128, ((b_pad_min // 2) // 128) * 128)
    b_pad = _round_up(batch, tb)
    num_steps = b_pad // tb

    # Pad + pre-cast once in the wrapper (no in-kernel casts of resident blocks).
    xp = jnp.zeros((b_pad, in_pad), mm).at[:batch, :in_dim].set(x.astype(mm))
    w1p = jnp.zeros((in_pad, hid_pad), mm).at[:in_dim, :hidden].set(w1.astype(mm))
    b1p = jnp.zeros((1, hid_pad), f32).at[:, :hidden].set(b1.astype(f32))

    x_spec = pl.BlockSpec((tb, in_pad), lambda i: (i, 0))

    def resident(shape):  # same block every step -> stays resident in VMEM
        return pl.BlockSpec(shape, lambda i: (0, 0))

    if out_dim == 1:
        # Lane-dense output: (1, b_pad) row; b2 is an SMEM scalar.
        w2t = jnp.zeros((1, hid_pad), mm).at[:, :hidden].set(w2[:, 0].astype(mm))
        b2s = b2.reshape((1,)).astype(f32)
        kernel = _mlp_kernel_lane_dense
        operands = (xp, w1p, b1p, w2t, b2s)
        w2_spec = resident((1, hid_pad))
        b2_spec = pl.BlockSpec(memory_space=pltpu.MemorySpace.SMEM)
        out_shape = jax.ShapeDtypeStruct((1, b_pad), out_dtype)
        out_spec = pl.BlockSpec((1, tb), lambda i: (0, i))
        out_tile_bytes = tb * jnp.dtype(out_dtype).itemsize
    else:
        w2p = jnp.zeros((hid_pad, out_dim), mm).at[:hidden, :].set(w2.astype(mm))
        b2f = b2.astype(f32)
        kernel = _mlp_kernel_matmul
        operands = (xp, w1p, b1p, w2p, b2f)
        w2_spec = resident((hid_pad, out_dim))
        b2_spec = resident((1, out_dim))
        out_shape = jax.ShapeDtypeStruct((b_pad, out_dim), out_dtype)
        out_spec = pl.BlockSpec((tb, out_dim), lambda i: (i, 0))
        out_tile_bytes = tb * max(out_dim, 128) * jnp.dtype(out_dtype).itemsize

    # VMEM budget: resident weights + double-buffered x/out tiles, x2 headroom,
    # clamped to v7x's 64 MiB physical VMEM.
    vmem_need = (
        in_pad * hid_pad * mm.itemsize            # resident w1
        + hid_pad * 4                             # resident b1 (f32)
        + hid_pad * max(out_dim, 1) * mm.itemsize # resident w2 / w2t
        + 2 * tb * in_pad * mm.itemsize           # double-buffered x tiles
        + 2 * out_tile_bytes                      # double-buffered out tiles
    )
    vmem_limit = int(min(max(2 * vmem_need, 8 * 1024 * 1024), 64 * 1024 * 1024))

    out_padded = pl.pallas_call(
        kernel,
        out_shape=out_shape,
        grid_spec=pl.GridSpec(
            grid=(num_steps,),
            in_specs=[x_spec,
                      resident((in_pad, hid_pad)),
                      resident((1, hid_pad)),
                      w2_spec,
                      b2_spec],
            out_specs=out_spec,
        ),
        compiler_params=pltpu.CompilerParams(
            dimension_semantics=("parallel",),
            vmem_limit_bytes=vmem_limit,
        ),
    )(*operands)

    if out_dim == 1:
        return out_padded[:, :batch].reshape(batch, 1)
    return out_padded[:batch]


def init_params(key, input_dim, hidden_dim, output_dim=1, dtype=jnp.float32):
    """PyTorch nn.Linear default init: U(-1/sqrt(fan_in), +1/sqrt(fan_in)).
    Weights stored as (in_features, out_features) == transpose of torch's (out, in)."""
    k1, k2, k3, k4 = jax.random.split(key, 4)
    bound1 = 1.0 / jnp.sqrt(input_dim)
    bound2 = 1.0 / jnp.sqrt(hidden_dim)
    w1 = jax.random.uniform(k1, (input_dim, hidden_dim), dtype, -bound1, bound1)
    b1 = jax.random.uniform(k2, (1, hidden_dim), dtype, -bound1, bound1)
    w2 = jax.random.uniform(k3, (hidden_dim, output_dim), dtype, -bound2, bound2)
    b2 = jax.random.uniform(k4, (1, output_dim), dtype, -bound2, bound2)
    return w1, b1, w2, b2


if __name__ == "__main__":
    batch, input_dim, hidden_dim, output_dim = 8, 32, 64, 1

    key = jax.random.PRNGKey(0)
    key_x, key_p, key_x2, key_p3 = jax.random.split(key, 4)
    x = jax.random.normal(key_x, (batch, input_dim), jnp.float32)
    w1, b1, w2, b2 = init_params(key_p, input_dim, hidden_dim, output_dim)

    # Plain-JAX reference (same math as the PyTorch module).
    ref = jnp.maximum(x @ w1 + b1, 0.0) @ w2 + b2

    # 1) f32 matmul path — tight tolerance.
    out_f32 = jax.block_until_ready(
        continue_model_forward(x, w1, b1, w2, b2, matmul_dtype=jnp.float32))
    assert out_f32.shape == (batch, output_dim)
    assert jnp.allclose(out_f32, ref, atol=1e-5, rtol=1e-5)

    # 2) bf16-operand / f32-accumulate path (default) — looser tolerance.
    out_bf16 = jax.block_until_ready(continue_model_forward(x, w1, b1, w2, b2))
    assert out_bf16.shape == (batch, output_dim)
    assert jnp.allclose(out_bf16, ref, atol=3e-2, rtol=3e-2)

    # 3) Multi-step grid (ragged batch, resident weights across steps,
    #    lane-dense (1, b_pad) output).
    batch2 = 300
    x2 = jax.random.normal(key_x2, (batch2, input_dim), jnp.float32)
    ref2 = jnp.maximum(x2 @ w1 + b1, 0.0) @ w2 + b2
    out2 = jax.block_until_ready(
        continue_model_forward(x2, w1, b1, w2, b2, tile_b=128,
                               matmul_dtype=jnp.float32))
    assert out2.shape == (batch2, output_dim)
    assert jnp.allclose(out2, ref2, atol=1e-5, rtol=1e-5)

    # 4) General out_dim > 1 path (two-MXU-matmul kernel).
    out_dim3 = 3
    w1c, b1c, w2c, b2c = init_params(key_p3, input_dim, hidden_dim, out_dim3)
    ref3 = jnp.maximum(x @ w1c + b1c, 0.0) @ w2c + b2c
    out3 = jax.block_until_ready(
        continue_model_forward(x, w1c, b1c, w2c, b2c, matmul_dtype=jnp.float32))
    assert out3.shape == (batch, out_dim3)
    assert jnp.allclose(out3, ref3, atol=1e-5, rtol=1e-5)

    print("KERNEL_OK")
</pallas_src>

<mosaic_0001>
module attributes {stable_mosaic.version = 11 : i64} {
  func.func @_mlp_kernel_lane_dense(%arg0: i32, %arg1: memref<128x128xf32, #tpu.memory_space<vmem>>, %arg2: memref<128x128xf32, #tpu.memory_space<vmem>>, %arg3: memref<1x128xf32, #tpu.memory_space<vmem>>, %arg4: memref<1x128xf32, #tpu.memory_space<vmem>>, %arg5: memref<1xf32, #tpu.memory_space<smem>>, %arg6: memref<1x128xf32, #tpu.memory_space<vmem>>) attributes {dimension_semantics = [#tpu.dimension_semantics<parallel>], iteration_bounds = array<i64: 1>, scalar_prefetch = 0 : i64, scratch_operands = 0 : i64, tpu.core_type = #tpu.core_type<tc>, window_params = [{transform_indices = @transform_0, window_bounds = array<i64: 128, 128>}, {pipeline_mode = #tpu.pipeline_mode<synchronous>, transform_indices = @transform_1, window_bounds = array<i64: 128, 128>}, {pipeline_mode = #tpu.pipeline_mode<synchronous>, transform_indices = @transform_2, window_bounds = array<i64: 1, 128>}, {pipeline_mode = #tpu.pipeline_mode<synchronous>, transform_indices = @transform_3, window_bounds = array<i64: 1, 128>}, {transform_indices = @transform_4, window_bounds = array<i64: 1>}, {transform_indices = @transform_5, window_bounds = array<i64: 1, 128>}]} {
    %c0 = arith.constant 0 : index
    %c0_0 = arith.constant 0 : index
    %0 = vector.load %arg1[%c0, %c0_0] : memref<128x128xf32, #tpu.memory_space<vmem>>, vector<128x128xf32>
    %c0_1 = arith.constant 0 : index
    %c0_2 = arith.constant 0 : index
    %1 = vector.load %arg2[%c0_1, %c0_2] : memref<128x128xf32, #tpu.memory_space<vmem>>, vector<128x128xf32>
    %cst = arith.constant dense<0.000000e+00> : vector<128x128xf32>
    %2 = tpu.matmul %0, %1, %cst {dimension_numbers = #tpu.dot_dimension_numbers<[1], [0], [0], [1], [0, 0, 1, 1], [], []>} : vector<128x128xf32>, vector<128x128xf32>, vector<128x128xf32> -> vector<128x128xf32>
    %c0_3 = arith.constant 0 : index
    %c0_4 = arith.constant 0 : index
    %3 = vector.load %arg3[%c0_3, %c0_4] : memref<1x128xf32, #tpu.memory_space<vmem>>, vector<1x128xf32>
    %4 = vector.broadcast %3 : vector<1x128xf32> to vector<128x128xf32>
    %5 = arith.addf %2, %4 : vector<128x128xf32>
    %cst_5 = arith.constant 0.000000e+00 : f32
    %6 = vector.broadcast %cst_5 : f32 to vector<128x128xf32>
    %7 = arith.maximumf %5, %6 : vector<128x128xf32>
    %c0_6 = arith.constant 0 : index
    %c0_7 = arith.constant 0 : index
    %8 = vector.load %arg4[%c0_6, %c0_7] : memref<1x128xf32, #tpu.memory_space<vmem>>, vector<1x128xf32>
    %cst_8 = arith.constant dense<0.000000e+00> : vector<1x128xf32>
    %9 = tpu.matmul %8, %7, %cst_8 {dimension_numbers = #tpu.dot_dimension_numbers<[1], [1], [0], [0], [0, 0, 1, 0], [], []>} : vector<1x128xf32>, vector<128x128xf32>, vector<1x128xf32> -> vector<1x128xf32>
    %c0_9 = arith.constant 0 : index
    %10 = memref.load %arg5[%c0_9] : memref<1xf32, #tpu.memory_space<smem>>
    %11 = vector.broadcast %10 : f32 to vector<1x128xf32>
    %12 = arith.addf %9, %11 : vector<1x128xf32>
    %c0_10 = arith.constant 0 : index
    %c0_11 = arith.constant 0 : index
    %13 = vector.load %arg6[%c0_10, %c0_11] : memref<1x128xf32, #tpu.memory_space<vmem>>, vector<1x128xf32>
    tpu.vector_store %arg6[%c0_10, %c0_11], %12 {strides = array<i32>} : memref<1x128xf32, #tpu.memory_space<vmem>>, vector<1x128xf32>,
    return
  }
  func.func @transform_0(%arg0: i32) -> (i32, i32) {
    %c0_i32 = arith.constant 0 : i32
    %c0_i32_0 = arith.constant 0 : i32
    return %arg0, %c0_i32 : i32, i32
  }
  func.func @transform_1(%arg0: i32) -> (i32, i32) {
    %c0_i32 = arith.constant 0 : i32
    %c0_i32_0 = arith.constant 0 : i32
    %c0_i32_1 = arith.constant 0 : i32
    return %c0_i32, %c0_i32_0 : i32, i32
  }
  func.func @transform_2(%arg0: i32) -> (i32, i32) {
    %c0_i32 = arith.constant 0 : i32
    %c0_i32_0 = arith.constant 0 : i32
    %c0_i32_1 = arith.constant 0 : i32
    return %c0_i32, %c0_i32_0 : i32, i32
  }
  func.func @transform_3(%arg0: i32) -> (i32, i32) {
    %c0_i32 = arith.constant 0 : i32
    %c0_i32_0 = arith.constant 0 : i32
    %c0_i32_1 = arith.constant 0 : i32
    return %c0_i32, %c0_i32_0 : i32, i32
  }
  func.func @transform_4(%arg0: i32) -> i32 {
    %c0_i32 = arith.constant 0 : i32
    %c0_i32_0 = arith.constant 0 : i32
    return %c0_i32 : i32
  }
  func.func @transform_5(%arg0: i32) -> (i32, i32) {
    %c0_i32 = arith.constant 0 : i32
    %c0_i32_0 = arith.constant 0 : i32
    return %c0_i32, %arg0 : i32, i32
  }
}

</mosaic_0001>

<bundles_post_ra>
// kernel: tpu_custom_call.1
= control target key start
LH: loop header
LB: loop body
LE: loop exit
PB: predicated region body
PF: predicated region fallthrough
CT: control target
= control target key end

     0   :  { %11 = vsyncpa [#allocation4], 0  ;;  %s382_s0 = inlined_call_operand.hbm [shape: f32[128,128], index: 0, kind: input, shape index: {}]   ;;  %s383_s1 = inlined_call_operand.hbm [shape: f32[128,128], index: 1, kind: input, shape index: {}]   ;;  %s384_s2 = inlined_call_operand.vmem [shape: f32[1,128], index: 2, kind: input, shape index: {}]   ;;  %s385_s3 = inlined_call_operand.vmem [shape: f32[1,128], index: 3, kind: input, shape index: {}]   ;;  %s386_s4 = inlined_call_operand.<no memory space> [shape: f32[1], index: 4, kind: input, shape index: {}]   ;;  %s387_s5 = inlined_call_operand.hbm [shape: f32[1,128], index: 5, kind: output, shape index: {}]  }
   0x1   :  { %12 = vsyncpa [#allocation7], 0 }
   0x2   :  { %13 = vsyncpa [#allocation5], 0  ;;  %s18_s20 = sshll.u32 %s382_s0, 4  ;;  %s329_s21 = smov [#allocation3]   ;;  %s19_s20 = int_to_ptr.hbm [resolvable:$true] %s18_s20 }
   0x3   :  { %s20_s22 = sshll.u32 %s329_s21, 4  ;;  %s31_s25 = sshll.u32 %s383_s1, 4  ;;  %s21_s22 = int_to_ptr.vmem [resolvable:$true] %s20_s22  ;;  %s32_s25 = int_to_ptr.hbm [resolvable:$true] %s31_s25 }
   0x4   :  { %s330_s26 = smov 128   ;;  %s331_s27 = smov 8  }
   0x5   :  { %26 = dma.hbm_to_vmem [thread:$0]  %s19_s20, 2048, %s21_s22, [#allocation4], %s330_s26, %s330_s26, %s331_s27  }
   0x6   :  { %s332_s28 = smov [#allocation6]  }
   0x7   :  { %s33_s29 = sshll.u32 %s332_s28, 4  ;;  %s34_s29 = int_to_ptr.vmem [resolvable:$true] %s33_s29 }
   0x8   :  { %39 = dma.hbm_to_vmem [thread:$0]  %s32_s25, 2048, %s34_s29, [#allocation7], %s330_s26, %s330_s26, %s331_s27  }
   0x9   :  { %323 = dma.done.wait [#allocation4], 2048  }
   0xa   :  { %324 = vsyncadd [#allocation4], 4294965248 }
   0xb   :  { %325 = dma.done.wait [#allocation7], 2048  }
   0xc   :  { %326 = vsyncadd [#allocation7], 4294965248  ;;  %v85_v0 = vld [vmem:[#allocation6 + $0x78] sm:$0xff]  ;;  %v84_v1 = vld [vmem:[#allocation6 + $0x70] sm:$0xff]  ;;  %s333_s8 = smov [#allocation8]   ;;  %s202_s12 = sshll.u32 %s387_s5, 4  ;;  %s203_s12 = int_to_ptr.hbm [resolvable:$true] %s202_s12 }
   0xd   :  { %214 = vmatpush.msra.mxu3 %v85_v0  ;;  %213 = vmatpush.msra.mxu2 %v85_v0  ;;  %v83_v2 = vld [vmem:[#allocation6 + $0x68] sm:$0xff]  ;;  %v82_v3 = vld [vmem:[#allocation6 + $0x60] sm:$0xff]  ;;  %v81_v4 = vld [vmem:[#allocation6 + $0x58] sm:$0xff]  ;;  %s200_s9 = sshll.u32 %s333_s8, 4  ;;  %s201_s9 = int_to_ptr.vmem [resolvable:$true] %s200_s9 }
   0xe   :  { %90 = vmatpush.msra.mxu0 %v85_v0  ;;  %v80_v5 = vld [vmem:[#allocation6 + $0x50] sm:$0xff]  ;;  %v79_v6 = vld [vmem:[#allocation6 + $0x48] sm:$0xff]  ;;  %v78_v7 = vld [vmem:[#allocation6 + $0x40] sm:$0xff] }
   0xf   :  { %216 = vmatpush.msra.mxu3 %v84_v1  ;;  %215 = vmatpush.msra.mxu2 %v84_v1  ;;  %v77_v8 = vld [vmem:[#allocation6 + $0x38] sm:$0xff]  ;;  %v76_v9 = vld [vmem:[#allocation6 + $0x30] sm:$0xff]  ;;  %v75_v10 = vld [vmem:[#allocation6 + $0x28] sm:$0xff] }
  0x10   :  { %91 = vmatpush.msra.mxu0 %v84_v1  ;;  %v74_v11 = vld [vmem:[#allocation6 + $0x20] sm:$0xff]  ;;  %v73_v12 = vld [vmem:[#allocation6 + $0x18] sm:$0xff]  ;;  %v72_v13 = vld [vmem:[#allocation6 + $0x10] sm:$0xff] }
  0x11   :  { %218 = vmatpush.msra.mxu3 %v83_v2  ;;  %217 = vmatpush.msra.mxu2 %v83_v2  ;;  %v71_v14 = vld [vmem:[#allocation6 + $0x8] sm:$0xff]  ;;  %v70_v15 = vld [vmem:[#allocation6] sm:$0xff]  ;;  %v65_v16 = vld [vmem:[#allocation3 + $0x58] sm:$0xff] }
  0x12   :  { %92 = vmatpush.msra.mxu0 %v83_v2  ;;  %v59_v17 = vld [vmem:[#allocation3 + $0x28] sm:$0xff]  ;;  %v54_v18 = vld [vmem:[#allocation3] sm:$0xff]  ;;  %v60_v20 = vld [vmem:[#allocation3 + $0x30] sm:$0xff] }
  0x13   :  { %220 = vmatpush.msra.mxu3 %v82_v3  ;;  %219 = vmatpush.msra.mxu2 %v82_v3  ;;  %v66_v19 = vld [vmem:[#allocation3 + $0x60] sm:$0xff]  ;;  %v55_v21 = vld [vmem:[#allocation3 + $0x8] sm:$0xff]  ;;  %v61_v23 = vld [vmem:[#allocation3 + $0x38] sm:$0xff] }
  0x14   :  { %93 = vmatpush.msra.mxu0 %v82_v3  ;;  %v67_v22 = vld [vmem:[#allocation3 + $0x68] sm:$0xff]  ;;  %v56_v24 = vld [vmem:[#allocation3 + $0x10] sm:$0xff]  ;;  %v62_v26 = vld [vmem:[#allocation3 + $0x40] sm:$0xff] }
  0x15   :  { %222 = vmatpush.msra.mxu3 %v81_v4  ;;  %221 = vmatpush.msra.mxu2 %v81_v4  ;;  %v68_v25 = vld [vmem:[#allocation3 + $0x70] sm:$0xff]  ;;  %v57_v27 = vld [vmem:[#allocation3 + $0x18] sm:$0xff]  ;;  %v63_v29 = vld [vmem:[#allocation3 + $0x48] sm:$0xff] }
  0x16   :  { %94 = vmatpush.msra.mxu0 %v81_v4  ;;  %v69_v28 = vld [vmem:[#allocation3 + $0x78] sm:$0xff]  ;;  %v58_v30 = vld [vmem:[#allocation3 + $0x20] sm:$0xff]  ;;  %v64_v31 = vld [vmem:[#allocation3 + $0x50] sm:$0xff] }
  0x17   :  { %224 = vmatpush.msra.mxu3 %v80_v5  ;;  %223 = vmatpush.msra.mxu2 %v80_v5  ;;  %v250_v41 = vld [vmem:[%s384_s2] ss:$0 sm:$0xff] }
  0x18   :  { %95 = vmatpush.msra.mxu0 %v80_v5 }
  0x19   :  { %226 = vmatpush.msra.mxu3 %v79_v6  ;;  %225 = vmatpush.msra.mxu2 %v79_v6 }
  0x1a   :  { %96 = vmatpush.msra.mxu0 %v79_v6 }
  0x1b   :  { %228 = vmatpush.msra.mxu3 %v78_v7  ;;  %227 = vmatpush.msra.mxu2 %v78_v7 }
  0x1c   :  { %97 = vmatpush.msra.mxu0 %v78_v7 }
  0x1d   :  { %230 = vmatpush.msra.mxu3 %v77_v8  ;;  %229 = vmatpush.msra.mxu2 %v77_v8 }
  0x1e   :  { %98 = vmatpush.msra.mxu0 %v77_v8 }
  0x1f   :  { %232 = vmatpush.msra.mxu3 %v76_v9  ;;  %231 = vmatpush.msra.mxu2 %v76_v9 }
  0x20   :  { %99 = vmatpush.msra.mxu0 %v76_v9 }
  0x21   :  { %234 = vmatpush.msra.mxu3 %v75_v10  ;;  %233 = vmatpush.msra.mxu2 %v75_v10 }
  0x22   :  { %100 = vmatpush.msra.mxu0 %v75_v10 }
  0x23   :  { %236 = vmatpush.msra.mxu3 %v74_v11  ;;  %235 = vmatpush.msra.mxu2 %v74_v11 }
  0x24   :  { %101 = vmatpush.msra.mxu0 %v74_v11 }
  0x25   :  { %238 = vmatpush.msra.mxu3 %v73_v12  ;;  %237 = vmatpush.msra.mxu2 %v73_v12 }
  0x26   :  { %102 = vmatpush.msra.mxu0 %v73_v12 }
  0x27   :  { %240 = vmatpush.msra.mxu3 %v72_v13  ;;  %239 = vmatpush.msra.mxu2 %v72_v13 }
  0x28   :  { %103 = vmatpush.msra.mxu0 %v72_v13 }
  0x29   :  { %242 = vmatpush.msra.mxu3 %v71_v14  ;;  %241 = vmatpush.msra.mxu2 %v71_v14 }
  0x2a   :  { %104 = vmatpush.msra.mxu0 %v71_v14 }
  0x2b   :  { %244 = vmatpush.msra.mxu3 %v70_v15  ;;  %243 = vmatpush.msra.mxu2 %v70_v15 }
  0x2c   :  { %139 = vmatmul.f32.vlgmr.msra.gmra.mxu3 %v65_v16  ;;  %121 = vmatmul.f32.vlgmr.msra.gmra.mxu2 %v59_v17  ;;  %v171_v17 = vld [vmem:[%s385_s3] sm:$0x1] }
  0x2d   :  { %105 = vmatpush.msra.mxu0 %v70_v15 }
  0x2e   :  { %106 = vmatmul.f32.vlgmr.msra.gmra.mxu0 %v54_v18  ;;  %v173_v18 = vstv %s386_s4 }
  0x34   :  { %142 = vmatmul.f32.gmra.mxu3 %v66_v19  ;;  %124 = vmatmul.f32.gmra.mxu2 %v60_v20 }
  0x36   :  { %109 = vmatmul.f32.gmra.mxu0 %v55_v21 }
  0x3c   :  { %145 = vmatmul.f32.gmra.mxu3 %v67_v22  ;;  %127 = vmatmul.f32.gmra.mxu2 %v61_v23 }
  0x3e   :  { %112 = vmatmul.f32.gmra.mxu0 %v56_v24 }
  0x44   :  { %148 = vmatmul.f32.gmra.mxu3 %v68_v25  ;;  %130 = vmatmul.f32.gmra.mxu2 %v62_v26 }
  0x46   :  { %115 = vmatmul.f32.gmra.mxu0 %v57_v27 }
  0x4c   :  { %151 = vmatmul.f32.gmra.mxu3 %v69_v28  ;;  %133 = vmatmul.f32.gmra.mxu2 %v63_v29 }
  0x4e   :  { %118 = vmatmul.f32.gmra.mxu0 %v58_v30 }
  0x54   :  { %136 = vmatmul.f32.gmra.mxu2 %v64_v31 }
  0xab   :  { %v107_v40 = vpop.f32.mrf.mxu0 }
  0xac   :  { %v108_v14 = vadd.f32 %v250_v41, %v107_v40 }
  0xae   :  { %v155_v16 = vmax.f32 %v108_v14, 0.0 }
  0xaf   :  { %v140_v32 = vpop.f32.mrf.mxu3  ;;  %v122_v33 = vpop.f32.mrf.mxu2 }
  0xb0   :  { %v141_v53 = vadd.f32 %v250_v41, %v140_v32  ;;  %v123_v4 = vadd.f32 %v250_v41, %v122_v33 }
  0xb2   :  { %v166_v57 = vmax.f32 %v141_v53, 0.0  ;;  %v160_v7 = vmax.f32 %v123_v4, 0.0 }
  0xb3   :  { %v110_v49 = vpop.f32.mrf.mxu0 }
  0xb4   :  { %v111_v12 = vadd.f32 %v250_v41, %v110_v49 }
  0xb6   :  { %v156_v15 = vmax.f32 %v111_v12, 0.0 }
  0xb7   :  { %v143_v34 = vpop.f32.mrf.mxu3  ;;  %v125_v35 = vpop.f32.mrf.mxu2 }
  0xb8   :  { %v144_v50 = vadd.f32 %v250_v41, %v143_v34  ;;  %v126_v1 = vadd.f32 %v250_v41, %v125_v35 }
  0xba   :  { %v167_v54 = vmax.f32 %v144_v50, 0.0  ;;  %v161_v5 = vmax.f32 %v126_v1, 0.0 }
  0xbb   :  { %v113_v56 = vpop.f32.mrf.mxu0 }
  0xbc   :  { %v114_v10 = vadd.f32 %v250_v41, %v113_v56 }
  0xbe   :  { %v157_v13 = vmax.f32 %v114_v10, 0.0 }
  0xbf   :  { %v146_v36 = vpop.f32.mrf.mxu3  ;;  %v128_v37 = vpop.f32.mrf.mxu2 }
  0xc0   :  { %v147_v47 = vadd.f32 %v250_v41, %v146_v36  ;;  %v129_v63 = vadd.f32 %v250_v41, %v128_v37 }
  0xc2   :  { %v168_v51 = vmax.f32 %v147_v47, 0.0  ;;  %v162_v2 = vmax.f32 %v129_v63, 0.0 }
  0xc3   :  { %v116_v62 = vpop.f32.mrf.mxu0 }
  0xc4   :  { %v117_v9 = vadd.f32 %v250_v41, %v116_v62 }
  0xc6   :  { %v158_v11 = vmax.f32 %v117_v9, 0.0 }
  0xc7   :  { %v149_v38 = vpop.f32.mrf.mxu3  ;;  %v131_v39 = vpop.f32.mrf.mxu2 }
  0xc8   :  { %v150_v44 = vadd.f32 %v250_v41, %v149_v38  ;;  %v132_v60 = vadd.f32 %v250_v41, %v131_v39 }
  0xca   :  { %v169_v48 = vmax.f32 %v150_v44, 0.0  ;;  %v163_v0 = vmax.f32 %v132_v60, 0.0 }
  0xcb   :  { %v119_v3 = vpop.f32.mrf.mxu0 }
  0xcc   :  { %v120_v6 = vadd.f32 %v250_v41, %v119_v3 }
  0xce   :  { %v159_v8 = vmax.f32 %v120_v6, 0.0 }
  0xcf   :  { %v152_v42 = vpop.f32.mrf.mxu3  ;;  %v134_v46 = vpop.f32.mrf.mxu2 }
  0xd0   :  { %v153_v43 = vadd.f32 %v250_v41, %v152_v42  ;;  %v135_v59 = vadd.f32 %v250_v41, %v134_v46 }
  0xd2   :  { %v170_v45 = vmax.f32 %v153_v43, 0.0  ;;  %v164_v61 = vmax.f32 %v135_v59, 0.0 }
  0xd4   :  { %174 = vmatpush.xpose.msra.mxu1 %v170_v45 }
  0xd7   :  { %v137_v52 = vpop.f32.mrf.mxu2 }
  0xd8   :  { %175 = vmatpush.xpose.msra.mxu1 %v169_v48  ;;  %v138_v55 = vadd.f32 %v250_v41, %v137_v52 }
  0xda   :  { %v165_v58 = vmax.f32 %v138_v55, 0.0 }
  0xdc   :  { %176 = vmatpush.xpose.msra.mxu1 %v168_v51 }
  0xe0   :  { %177 = vmatpush.xpose.msra.mxu1 %v167_v54 }
  0xe4   :  { %178 = vmatpush.xpose.msra.mxu1 %v166_v57 }
  0xe8   :  { %179 = vmatpush.xpose.msra.mxu1 %v165_v58 }
  0xec   :  { %180 = vmatpush.xpose.msra.mxu1 %v164_v61 }
  0xf0   :  { %181 = vmatpush.xpose.msra.mxu1 %v163_v0 }
  0xf4   :  { %182 = vmatpush.xpose.msra.mxu1 %v162_v2 }
  0xf8   :  { %183 = vmatpush.xpose.msra.mxu1 %v161_v5 }
  0xfc   :  { %184 = vmatpush.xpose.msra.mxu1 %v160_v7 }
 0x100   :  { %185 = vmatpush.xpose.msra.mxu1 %v159_v8 }
 0x104   :  { %186 = vmatpush.xpose.msra.mxu1 %v158_v11 }
 0x108   :  { %187 = vmatpush.xpose.msra.mxu1 %v157_v13 }
 0x10c   :  { %188 = vmatpush.xpose.msra.mxu1 %v156_v15 }
 0x110   :  { %189 = vmatpush.xpose.msra.mxu1 %v155_v16 }
 0x113   :  { %190 = vmatmul.f32.vlgmr.msra.gmra.mxu1 %v171_v17 }
 0x190   :  { %v191_v19 = vpop.f32.mrf.mxu1 }
 0x191   :  { %v192_v20 = vadd.f32 %v191_v19, %v173_v18 }
 0x193   :  { %194 = vst [vmem:[#allocation8] sm:$0x1] %v192_v20 }
 0x194   :  { %205 = dma.vmem_to_hbm [thread:$0]  %s201_s9, 16, %s203_s12, [#allocation5]  }
 0x195   :  { %327 = dma.done.wait [#allocation5], 16  }
 0x196   :  { %328 = vsyncadd [#allocation5], 4294967280 }
 0x197   :  { %210 = vsyncpa [#allocation4], 1 }
 0x198   :  { %211 = vsyncpa [#allocation7], 1 }
 0x199   :  { %212 = vsyncpa [#allocation5], 1 }

</bundles_post_ra>
